<compile_context>
chip_gen: v6e
topology: v6e:2x2x1
jax: 0.10.0
libtpu: 0.0.40
codegen_flags: <defaults>
</compile_context>

<pallas_src>
import functools

import jax
import jax.numpy as jnp
from jax.experimental import pallas as pl
from jax.experimental.pallas import tpu as pltpu


def attention_block_kernel(g_ref, x_ref, p_ref, out_ref, *, nb, F_g, F_l):
    # g_ref/x_ref/out_ref blocks: (nb, C, lane) -- channels on sublanes,
    # spatial on lanes.  p_ref: (F_int, F_g+F_l+3) packed, BN-folded params.
    p = p_ref[...]
    wg = p[:, :F_g]                               # (F_int, F_g)
    wx = p[:, F_g:F_g + F_l]                      # (F_int, F_l)
    b_sum = p[:, F_g + F_l:F_g + F_l + 1]         # (F_int, 1)   bg + bx
    wpsi = p[:, F_g + F_l + 1:F_g + F_l + 2]      # (F_int, 1)   psi weight col
    bpsi = p[:1, F_g + F_l + 2:F_g + F_l + 3]     # (1, 1)       psi bias

    # Static unroll over the (small) number of batch elements in this block.
    for n in range(nb):
        g_n = g_ref[n].astype(jnp.float32)        # (F_g, lane)
        x_n = x_ref[n].astype(jnp.float32)        # (F_l, lane)

        # Fused gating branch: relu(Wg@g + Wx@x + (bg+bx)).  K is tiny but the
        # MXU has huge slack here; this dot lowering compiled/ran clean before.
        a = jnp.dot(wg, g_n, preferred_element_type=jnp.float32)
        a = a + jnp.dot(wx, x_n, preferred_element_type=jnp.float32)
        a = jnp.maximum(a + b_sum, 0.0)           # (F_int, lane)

        # psi projection to 1 channel: VPU multiply + sublane reduce (avoids a
        # lane-width-1 MXU result); the gate stays lane-dense.
        logits = jnp.sum(a * wpsi, axis=0, keepdims=True) + bpsi
        psi = jax.nn.sigmoid(logits)              # (1, lane)

        # Gate x; psi broadcasts over the channel sublanes for free.  Single
        # lane-dense store per batch element (masked only on a partial block).
        out_ref[n] = (x_n * psi).astype(out_ref.dtype)


def _pick_tiles(N, M, F_g, F_l, F_int, itemsize, tm):
    """Choose (lane, nb, vmem_estimate_bytes) for the given problem size."""
    tm = max(128, (int(tm) // 128) * 128)         # lane tile must be 128-aligned
    m128 = pl.cdiv(M, 128) * 128

    def vmem_bytes(nb, lane):
        io = 2 * nb * (F_g + 2 * F_l) * lane * itemsize   # double-buffered g/x/out
        inter = nb * (F_int + F_l + 3) * lane * 4         # f32 intermediates
        return io + inter

    # Conservative budget (v7x has only 64 MiB physical VMEM per TensorCore).
    budget = 20 << 20
    lane = min(tm, m128)
    while lane > 128 and vmem_bytes(1, lane) > budget:
        lane -= 128

    nb = 1
    m_blocks = pl.cdiv(M, lane)
    if m_blocks == 1 and N > 1:
        # Small spatial extent: pack several batch elements per grid step so a
        # step moves a few MiB of fresh HBM traffic, but keep >= 2 grid blocks
        # so both v7x TensorCores get work.
        per_b = (F_g + 2 * F_l) * lane * itemsize
        nb = int(max(1, (4 << 20) // max(per_b, 1)))
        nb = min(nb, max(1, N // 2))
        while nb > 1 and vmem_bytes(nb, lane) > budget:
            nb -= 1
        while N % nb:                              # avoid partial batch blocks
            nb -= 1
    return lane, nb, vmem_bytes(nb, lane)


def attention_block(g_ncm, x_ncm, wg, wx, b_sum, wpsi_col, bpsi, *, tm=65536):
    """g_ncm/x_ncm: (N, C, M) with M = H*W (pure reshape of NCHW).
       Weights already BN-folded (eval-mode running stats):
         wg (F_int, F_g), wx (F_int, F_l), b_sum (F_int, 1) = bg + bx,
         wpsi_col (F_int, 1), bpsi scalar-like.
       Returns (N, F_l, M)."""
    N, F_g, M = g_ncm.shape
    _, F_l, _ = x_ncm.shape
    F_int = wg.shape[0]
    itemsize = jnp.dtype(x_ncm.dtype).itemsize

    lane, nb, vmem_est = _pick_tiles(N, M, F_g, F_l, F_int, itemsize, tm)
    grid = (N // nb, pl.cdiv(M, lane))

    # Pack all tiny parameters into a single VMEM operand.
    P = F_g + F_l + 3
    bpsi_scalar = jnp.asarray(bpsi, jnp.float32).reshape(())
    params = jnp.concatenate(
        [wg.astype(jnp.float32).reshape(F_int, F_g),
         wx.astype(jnp.float32).reshape(F_int, F_l),
         b_sum.astype(jnp.float32).reshape(F_int, 1),
         wpsi_col.astype(jnp.float32).reshape(F_int, 1),
         jnp.full((F_int, 1), bpsi_scalar, jnp.float32)], axis=1)

    kernel = functools.partial(attention_block_kernel, nb=nb, F_g=F_g, F_l=F_l)

    # Scoped VMEM: above the 16 MiB (v5e) / 32 MiB (v6e, v7x) defaults when big
    # tiles need it, but well below v7x's 64 MiB physical VMEM.
    vmem_limit = int(min(40 << 20, max(16 << 20, 2 * vmem_est)))

    return pl.pallas_call(
        kernel,
        out_shape=jax.ShapeDtypeStruct((N, F_l, M), x_ncm.dtype),
        grid_spec=pltpu.PrefetchScalarGridSpec(
            num_scalar_prefetch=0,
            grid=grid,
            in_specs=[
                pl.BlockSpec((nb, F_g, lane), lambda b, i: (b, 0, i)),   # g
                pl.BlockSpec((nb, F_l, lane), lambda b, i: (b, 0, i)),   # x
                pl.BlockSpec((F_int, P), lambda b, i: (0, 0)),           # packed params
            ],
            out_specs=pl.BlockSpec((nb, F_l, lane), lambda b, i: (b, 0, i)),
        ),
        compiler_params=pltpu.CompilerParams(
            dimension_semantics=("parallel", "parallel"),
            vmem_limit_bytes=vmem_limit),
    )(g_ncm, x_ncm, params)


def fold_bn(w, b, gamma, beta, mean, var, eps=1e-5):
    """Fold eval-mode BatchNorm2d into a preceding 1x1 conv.
       w: (C_out, C_in); returns (C_out, C_in) and (C_out, 1)."""
    scale = gamma / jnp.sqrt(var + eps)
    w_eff = w * scale[:, None]
    b_eff = (b - mean) * scale + beta
    return w_eff, b_eff[:, None]


def _reference(g_ncm, x_ncm, wg, wx, b_sum, wpsi_col, bpsi):
    gf = g_ncm.astype(jnp.float32)
    xf = x_ncm.astype(jnp.float32)
    a = (jnp.einsum('oc,ncm->nom', wg, gf)
         + jnp.einsum('oc,ncm->nom', wx, xf) + b_sum[None])
    a = jnp.maximum(a, 0.0)
    logits = jnp.einsum('o,nom->nm', wpsi_col[:, 0], a)[:, None, :]
    logits = logits + jnp.asarray(bpsi, jnp.float32).reshape(())
    psi = jax.nn.sigmoid(logits)
    return (xf * psi).astype(x_ncm.dtype)


def _run_case(key, N, H, W, F_g, F_l, F_int, dtype=jnp.float32, tm=65536, tol=1e-5):
    ks = jax.random.split(key, 8)
    g_nchw = jax.random.normal(ks[0], (N, F_g, H, W), dtype)
    x_nchw = jax.random.normal(ks[1], (N, F_l, H, W), dtype)

    # 1x1 conv weights in PyTorch (C_out, C_in) layout + biases.
    wg = 0.1 * jax.random.normal(ks[2], (F_int, F_g), jnp.float32)
    bg = 0.1 * jax.random.normal(ks[3], (F_int,), jnp.float32)
    wx = 0.1 * jax.random.normal(ks[4], (F_int, F_l), jnp.float32)
    bx = 0.1 * jax.random.normal(ks[5], (F_int,), jnp.float32)
    wpsi = 0.1 * jax.random.normal(ks[6], (1, F_int), jnp.float32)
    bpsi = 0.1 * jax.random.normal(ks[7], (1,), jnp.float32)

    # Eval-mode BatchNorm parameters (deterministic running stats).
    # TODO(synk): PyTorch BN in train() mode would use batch statistics; only
    # eval-mode (running-stat) BN is implemented and folded here.
    gam_g = jnp.linspace(0.9, 1.1, F_int); bet_g = jnp.linspace(-0.05, 0.05, F_int)
    mu_g = jnp.linspace(-0.1, 0.1, F_int); var_g = jnp.linspace(0.8, 1.2, F_int)
    gam_x = jnp.ones((F_int,)); bet_x = jnp.zeros((F_int,))
    mu_x = jnp.zeros((F_int,)); var_x = jnp.ones((F_int,))
    gam_p = jnp.ones((1,)); bet_p = jnp.zeros((1,))
    mu_p = jnp.zeros((1,)); var_p = jnp.ones((1,))

    wg_e, bg_e = fold_bn(wg, bg, gam_g, bet_g, mu_g, var_g)
    wx_e, bx_e = fold_bn(wx, bx, gam_x, bet_x, mu_x, var_x)
    wp_e, bp_e = fold_bn(wpsi, bpsi, gam_p, bet_p, mu_p, var_p)
    b_sum = bg_e + bx_e                 # fused branch biases, (F_int, 1)
    wpsi_col = wp_e.T                   # (F_int, 1)

    M = H * W
    g_ncm = g_nchw.reshape(N, F_g, M)   # pure reshape, no transpose / relayout
    x_ncm = x_nchw.reshape(N, F_l, M)

    out = attention_block(g_ncm, x_ncm, wg_e, wx_e, b_sum, wpsi_col, bp_e, tm=tm)
    jax.block_until_ready(out)

    ref = _reference(g_ncm, x_ncm, wg_e, wx_e, b_sum, wpsi_col, bp_e)
    assert jnp.allclose(out.astype(jnp.float32), ref.astype(jnp.float32),
                        atol=tol, rtol=tol), f"mismatch for case {(N, H, W, str(dtype))}"


if __name__ == "__main__":
    key = jax.random.PRNGKey(0)
    k1, k2, k3, k4, k5 = jax.random.split(key, 5)

    # Canonical small shape matching the module (batch=2, channels=4, 16x16).
    _run_case(k1, N=2, H=16, W=16, F_g=4, F_l=4, F_int=8)
    # Tiny spatial extent -> nb>1 batch packing + masked partial lane block.
    _run_case(k2, N=4, H=8, W=8, F_g=4, F_l=4, F_int=8)
    # Spatial extent not a multiple of 128 -> masked partial last block, no pad.
    _run_case(k3, N=2, H=50, W=50, F_g=4, F_l=4, F_int=8)
    # Multiple lane blocks along the spatial grid axis.
    _run_case(k4, N=2, H=64, W=64, F_g=4, F_l=4, F_int=8, tm=1024)
    # Optional bf16 streaming path (halves HBM bytes; f32 math inside kernel).
    _run_case(k5, N=2, H=16, W=16, F_g=4, F_l=4, F_int=8,
              dtype=jnp.bfloat16, tol=2e-2)

    print("KERNEL_OK")
</pallas_src>

<mosaic_0001>
module attributes {stable_mosaic.version = 11 : i64} {
  func.func @attention_block_kernel(%arg0: i32, %arg1: i32, %arg2: memref<1x4x256xf32, #tpu.memory_space<vmem>>, %arg3: memref<1x4x256xf32, #tpu.memory_space<vmem>>, %arg4: memref<8x11xf32, #tpu.memory_space<vmem>>, %arg5: memref<1x4x256xf32, #tpu.memory_space<vmem>>) attributes {dimension_semantics = [#tpu.dimension_semantics<parallel>, #tpu.dimension_semantics<parallel>], iteration_bounds = array<i64: 2, 1>, scalar_prefetch = 0 : i64, scratch_operands = 0 : i64, tpu.core_type = #tpu.core_type<tc>, window_params = [{transform_indices = @transform_0, window_bounds = array<i64: 1, 4, 256>}, {transform_indices = @transform_1, window_bounds = array<i64: 1, 4, 256>}, {pipeline_mode = #tpu.pipeline_mode<synchronous>, transform_indices = @transform_2, window_bounds = array<i64: 8, 11>}, {transform_indices = @transform_3, window_bounds = array<i64: 1, 4, 256>}]} {
    %c0 = arith.constant 0 : index
    %c0_0 = arith.constant 0 : index
    %0 = vector.load %arg4[%c0, %c0_0] : memref<8x11xf32, #tpu.memory_space<vmem>>, vector<8x11xf32>
    %1 = vector.extract_strided_slice %0 {offsets = [0, 0], sizes = [8, 4], strides = [1, 1]} : vector<8x11xf32> to vector<8x4xf32>
    %2 = vector.extract_strided_slice %0 {offsets = [0, 4], sizes = [8, 4], strides = [1, 1]} : vector<8x11xf32> to vector<8x4xf32>
    %3 = vector.extract_strided_slice %0 {offsets = [0, 8], sizes = [8, 1], strides = [1, 1]} : vector<8x11xf32> to vector<8x1xf32>
    %4 = vector.extract_strided_slice %0 {offsets = [0, 9], sizes = [8, 1], strides = [1, 1]} : vector<8x11xf32> to vector<8x1xf32>
    %5 = vector.extract_strided_slice %0 {offsets = [0, 10], sizes = [1, 1], strides = [1, 1]} : vector<8x11xf32> to vector<1x1xf32>
    %c0_1 = arith.constant 0 : index
    %c0_2 = arith.constant 0 : index
    %c0_3 = arith.constant 0 : index
    %6 = vector.load %arg2[%c0_1, %c0_2, %c0_3] : memref<1x4x256xf32, #tpu.memory_space<vmem>>, vector<1x4x256xf32>
    %7 = vector.shape_cast %6 : vector<1x4x256xf32> to vector<4x256xf32>
    %c0_4 = arith.constant 0 : index
    %c0_5 = arith.constant 0 : index
    %c0_6 = arith.constant 0 : index
    %8 = vector.load %arg3[%c0_4, %c0_5, %c0_6] : memref<1x4x256xf32, #tpu.memory_space<vmem>>, vector<1x4x256xf32>
    %9 = vector.shape_cast %8 : vector<1x4x256xf32> to vector<4x256xf32>
    %cst = arith.constant dense<0.000000e+00> : vector<8x256xf32>
    %10 = tpu.matmul %1, %7, %cst {dimension_numbers = #tpu.dot_dimension_numbers<[1], [0], [0], [1], [0, 0, 1, 1], [], []>} : vector<8x4xf32>, vector<4x256xf32>, vector<8x256xf32> -> vector<8x256xf32>
    %cst_7 = arith.constant dense<0.000000e+00> : vector<8x256xf32>
    %11 = tpu.matmul %2, %9, %cst_7 {dimension_numbers = #tpu.dot_dimension_numbers<[1], [0], [0], [1], [0, 0, 1, 1], [], []>} : vector<8x4xf32>, vector<4x256xf32>, vector<8x256xf32> -> vector<8x256xf32>
    %12 = arith.addf %10, %11 : vector<8x256xf32>
    %13 = vector.broadcast %3 : vector<8x1xf32> to vector<8x256xf32>
    %14 = arith.addf %12, %13 : vector<8x256xf32>
    %cst_8 = arith.constant 0.000000e+00 : f32
    %15 = vector.broadcast %cst_8 : f32 to vector<8x256xf32>
    %16 = arith.maximumf %14, %15 : vector<8x256xf32>
    %17 = vector.broadcast %4 : vector<8x1xf32> to vector<8x256xf32>
    %18 = arith.mulf %16, %17 : vector<8x256xf32>
    %cst_9 = arith.constant dense<0.000000e+00> : vector<256xf32>
    %19 = vector.multi_reduction <add>, %18, %cst_9 [0] : vector<8x256xf32> to vector<256xf32>
    %20 = vector.shape_cast %19 : vector<256xf32> to vector<1x256xf32>
    %21 = vector.broadcast %5 : vector<1x1xf32> to vector<1x256xf32>
    %22 = arith.addf %20, %21 : vector<1x256xf32>
    %23 = arith.negf %22 : vector<1x256xf32>
    %24 = math.exp %23 : vector<1x256xf32>
    %cst_10 = arith.constant 1.000000e+00 : f32
    %25 = vector.broadcast %cst_10 : f32 to vector<1x256xf32>
    %26 = arith.addf %25, %24 : vector<1x256xf32>
    %27 = arith.divf %25, %26 : vector<1x256xf32>
    %28 = vector.broadcast %27 : vector<1x256xf32> to vector<4x256xf32>
    %29 = arith.mulf %9, %28 : vector<4x256xf32>
    %c0_11 = arith.constant 0 : index
    %c0_12 = arith.constant 0 : index
    %c0_13 = arith.constant 0 : index
    %30 = vector.load %arg5[%c0_11, %c0_12, %c0_13] : memref<1x4x256xf32, #tpu.memory_space<vmem>>, vector<1x4x256xf32>
    %31 = vector.shape_cast %30 : vector<1x4x256xf32> to vector<4x256xf32>
    %32 = vector.shape_cast %29 : vector<4x256xf32> to vector<1x4x256xf32>
    tpu.vector_store %arg5[%c0_11, %c0_12, %c0_13], %32 {strides = array<i32>} : memref<1x4x256xf32, #tpu.memory_space<vmem>>, vector<1x4x256xf32>,
    return
  }
  func.func @transform_0(%arg0: i32, %arg1: i32) -> (i32, i32, i32) {
    %c0_i32 = arith.constant 0 : i32
    %c0_i32_0 = arith.constant 0 : i32
    return %arg0, %c0_i32, %arg1 : i32, i32, i32
  }
  func.func @transform_1(%arg0: i32, %arg1: i32) -> (i32, i32, i32) {
    %c0_i32 = arith.constant 0 : i32
    %c0_i32_0 = arith.constant 0 : i32
    return %arg0, %c0_i32, %arg1 : i32, i32, i32
  }
  func.func @transform_2(%arg0: i32, %arg1: i32) -> (i32, i32) {
    %c0_i32 = arith.constant 0 : i32
    %c0_i32_0 = arith.constant 0 : i32
    %c0_i32_1 = arith.constant 0 : i32
    return %c0_i32, %c0_i32_0 : i32, i32
  }
  func.func @transform_3(%arg0: i32, %arg1: i32) -> (i32, i32, i32) {
    %c0_i32 = arith.constant 0 : i32
    %c0_i32_0 = arith.constant 0 : i32
    return %arg0, %c0_i32, %arg1 : i32, i32, i32
  }
}

</mosaic_0001>

<bundles_post_ra>
// kernel: tpu_custom_call.1
= control target key start
LH: loop header
LB: loop body
LE: loop exit
PB: predicated region body
PF: predicated region fallthrough
CT: control target
= control target key end

     0   :  { %s1140_s0 = inlined_call_operand.hbm [shape: f32[2,4,256], index: 0, kind: input, shape index: {}]   ;;  %s1141_s1 = inlined_call_operand.hbm [shape: f32[2,4,256], index: 1, kind: input, shape index: {}]   ;;  %s1142_s2 = inlined_call_operand.hbm [shape: f32[8,11], index: 2, kind: input, shape index: {}]   ;;  %s1143_s3 = inlined_call_operand.hbm [shape: f32[2,4,256], index: 3, kind: output, shape index: {}]  }
   0x1   :  { %1144 = sst [smem:[#allocation13_spill]] %s1140_s0 }
   0x2   :  { %8 = vsyncpa [#allocation3], 0 }
   0x3   :  { %10 = vsyncpa [#allocation3 + $0x1], 0 }
   0x4   :  { %11 = vsyncpa [#allocation6], 0 }
   0x5   :  { %13 = vsyncpa [#allocation6 + $0x1], 0 }
   0x6   :  { %14 = vsyncpa [#allocation4], 0 }
   0x7   :  { %16 = vsyncpa [#allocation4 + $0x1], 0  ;;  %s952_s12 = smov 0   ;;  %s954_s13 = smov 0  }
   0x8   :  { %s956_s14 = smov 0   ;;  %s958_s15 = smov 0  }
   0x9   :  { %s960_s16 = smov 0   ;;  %s962_s17 = smov 0  }
   0xa LB: > { %s983_s18 = sadd.s32 4294967295, %s921_s17   ;;  %s623_s19 = sadd.s32 4294967294, %s921_s17   ;;  %s921_s17 = sphi %s962_s17, %s22_s17   ;;  %s917_s16 = sphi %s960_s16, %s1159_s16   ;;  %s913_s15 = sphi %s958_s15, %s1158_s15   ;;  %s909_s14 = sphi %s956_s14, %s1157_s14   ;;  %s905_s13 = sphi %s954_s13, %s1156_s13   ;;  %s901_s12 = sphi %s952_s12, %s1155_s12  }
   0xb   : > { %p56_p0 = scmp.ne.s32.totalorder %s905_s13, %s901_s12  ;;  %p57_p1 = scmp.eq.s32.totalorder %s983_s18, 0 }
   0xc   : > { %p137_p3 = scmp.eq.s32.totalorder %s623_s19, 1  ;;  %p624_p5 = scmp.ge.s32.totalorder %s921_s17, 1 }
   0xd   : > { %p992_p4 = por %p57_p1, %p56_p0  ;;  %p144_p7 = scmp.lt.s32.totalorder %s921_s17, 3 }
   0xe   : > { %p997_p6 = por %p137_p3, %p56_p0  ;;  %s923_s23 = smov [#allocation7]  }
   0xf   : > { %p1002_p8 = pnand %p624_p5, %p144_p7  ;;  %s157_s24 = sshll.u32 %s923_s23, 4  ;;  %s158_s24 = int_to_ptr.vmem [resolvable:$true] %s157_s24 }
  0x10   : > { %s1146_s21 = scalar_select %p997_p6, 1, 0 }
  0x11   : > { %p664_p10 = pneg %p1002_p8  ;;  %s34_s26 = sadd.s32 1, %s917_s16 }
  0x12   : > { %s43_s27 = sadd.s32 1, %s909_s14  ;;  %p36_p12 = scmp.ge.s32.totalorder %s34_s26, 2 }
  0x13   : > { %p1011_p11 = pnand %p664_p10, %p57_p1  ;;  %s762_s28 = scalar_lea.vmem %s158_s24, 128 }
  0x14   : > { %p763_p0 = scmp.ne.s32.totalorder %s158_s24, %s762_s28  ;;  %p770_p7 = scmp.lt.s32.totalorder %s158_s24, %s158_s24 }
  0x15   : > { %p753_p13 = pneg %p1011_p11  ;;  %p771_p2 = scmp.lt.s32.totalorder %s762_s28, %s762_s28 }
  0x17   : > { %p765_p3 = pnand %p763_p0, %p753_p13  ;;  %p772_p9 = por %p771_p2, %p770_p7 }
  0x19   : > { %p766_p5 = pneg %p765_p3 }
  0x1b   : > { %p773_p6 = pnand %p772_p9, %p766_p5 }
  0x1d   : > { %776 = shalt.err (!%p773_p6)
}
  0x1e   : > { %667 = dma.hbm_to_vmem [thread:$0]  (!%p1011_p11), %s1142_s2, 128, %s158_s24, [#allocation6]  }
  0x1f   : > { %s1161_s26 = smov (%p36_p12, %s34_s26), 0  ;;  %p50_p2 = scmp.ne.s32.totalorder %s909_s14, %s905_s13 }
  0x20   : > { %p51_p6 = scmp.eq.s32.totalorder %s921_s17, 0  ;;  %s38_s4 = ssub.s32 %s917_s16, %s1161_s26 }
  0x21   : > { %p680_p9 = scmp.lt.s32.totalorder %s921_s17, 2  ;;  %p41_p10 = scmp.eq.s32.totalorder %s38_s4, 0 }
  0x22   : > { %p52_p13 = por %p51_p6, %p50_p2  ;;  %p1149_p0 = scmp.eq.s32.totalorder %s983_s18, 1 }
  0x23   : > { %s168_s6 = sand.u32 1, %s909_s14   ;;  %s651_s9 = sshll.u32 %s917_s16, 7 }
  0x24   : > { %p1034_p3 = por %p1149_p0, %p50_p2  ;;  %s627_s8 = sshll.u32 %s168_s6, 3 }
  0x25   : > { %s1040_s7 = scalar_select %p41_p10, %s909_s14, %s43_s27  }
  0x26   : > { %s1151_s0 = sld [smem:[#allocation13_spill]]  ;;  %s172_s23 = scalar_lea.vmem [#allocation2], %s627_s8 }
  0x27   : > { %s182_s24 = sshll.u32 %s172_s23, 4  ;;  %p1046_p11 = pnand %p680_p9, %p52_p13  ;;  %s183_s24 = int_to_ptr.vmem [resolvable:$true] %s182_s24 }
  0x28   : > { %s1053_s27 = scalar_lea.hbm %s1141_s1, %s651_s9  ;;  %s189_s30 = sand.u32 1, %s921_s17  }
  0x29   : > { %s169_s4 = scalar_lea.sflag [#allocation3], %s168_s6  ;;  %p779_p12 = pneg %p1046_p11 }
  0x2a   : > { %s790_s10 = scalar_lea.vmem %s183_s24, 128  ;;  %s924_s11 = smov [#allocation2]  }
  0x2b   : > { %p791_p5 = scmp.ne.s32.totalorder %s183_s24, %s790_s10  ;;  %s795_s23 = sshll.u32 %s924_s11, 4  ;;  %s796_s23 = int_to_ptr.vmem [resolvable:$false] %s795_s23 }
  0x2c   : > { %s180_s19 = scalar_lea.hbm %s1151_s0, %s651_s9  ;;  %s797_s0 = scalar_lea.vmem %s796_s23, 256 }
  0x2d   : > { %p793_p7 = pnand %p791_p5, %p779_p12  ;;  %p798_p6 = scmp.lt.s32.totalorder %s183_s24, %s796_s23 }
  0x2e   : > { %p799_p9 = scmp.lt.s32.totalorder %s797_s0, %s790_s10 }
  0x2f   : > { %p794_p2 = pneg %p793_p7 }
  0x30   : > { %p800_p10 = por %p799_p9, %p798_p6 }
  0x32   : > { %p801_p13 = pnand %p800_p10, %p794_p2 }
  0x34   : > { %804 = shalt.err (!%p801_p13)
}
  0x35   : > { %671 = dma.hbm_to_vmem [thread:$0]  (!%p1046_p11), %s180_s19, 128, %s183_s24, %s169_s4  }
  0x36   : > { %s193_s6 = scalar_lea.vmem [#allocation5], %s627_s8  ;;  %s190_s28 = scalar_lea.sflag [#allocation6], %s189_s30 }
  0x37   : > { %s203_s9 = sshll.u32 %s193_s6, 4  ;;  %s925_s11 = smov [#allocation5]   ;;  %s204_s9 = int_to_ptr.vmem [resolvable:$true] %s203_s9 }
  0x38   : > { %s818_s29 = scalar_lea.vmem %s204_s9, 128  ;;  %s823_s23 = sshll.u32 %s925_s11, 4  ;;  %s824_s23 = int_to_ptr.vmem [resolvable:$false] %s823_s23 }
  0x39   : > { %p819_p0 = scmp.ne.s32.totalorder %s204_s9, %s818_s29  ;;  %s825_s0 = scalar_lea.vmem %s824_s23, 256 }
  0x3a   : > { %p826_p2 = scmp.lt.s32.totalorder %s204_s9, %s824_s23  ;;  %p827_p6 = scmp.lt.s32.totalorder %s825_s0, %s818_s29 }
  0x3b   : > { %p821_p5 = pnand %p819_p0, %p779_p12 }
  0x3c   : > { %p828_p9 = por %p827_p6, %p826_p2 }
  0x3d   : > { %p822_p7 = pneg %p821_p5 }
  0x3f   : > { %p829_p10 = pnand %p828_p9, %p822_p7 }
  0x41   : > { %832 = shalt.err (!%p829_p10)
}
  0x42   : > { %674 = dma.hbm_to_vmem [thread:$0]  (!%p1046_p11), %s1053_s27, 128, %s204_s9, %s190_s28  }
  0x43   : > { %212 = sbr.rel (%p1002_p8) target bundleno = 464 (0x1d0), region = 32  ;;  %s1072_s8 = sand.u32 (!%p1002_p8), 1, %s905_s13  }
  0x44   : > { %s1075_s19 = sshll.u32 (!%p1002_p8), %s1072_s8, 3  ;;  %s215_s24 = scalar_lea.sflag (!%p1002_p8), [#allocation3], %s1072_s8 }
  0x45   : > { %s218_s30 = scalar_lea.vmem (!%p1002_p8), [#allocation2], %s1075_s19 }
  0x48   : > { %884 = dma.done.wait (%p992_p4), %s215_s24, 128  }
  0x49   : > { %886 = vsyncadd (%p992_p4), %s215_s24, 4294967168  ;;  %s223_s22 = sand.u32 1, %s983_s18   ;;  %s227_s27 = scalar_lea.vmem [#allocation5], %s1075_s19 }
  0x4a   : > { %s224_s25 = scalar_lea.sflag [#allocation6], %s223_s22 }
  0x4b   : > { %888 = dma.done.wait (%p992_p4), %s224_s25, 128  }
  0x4c   : > { %890 = vsyncadd (%p992_p4), %s224_s25, 4294967168 }
  0x4d   : > { %892 = dma.done.wait (%p57_p1), [#allocation6], 128  }
  0x4e   : > { %894 = vsyncadd (%p57_p1), [#allocation6], 4294967168  ;;  %v926_v0 = vmov 0.0   ;;  %v927_v1 = vmov 8   ;;  %v928_v2 = vmov 9   ;;  %v262_v3 = vld [vmem:[#allocation7] sm:$0xff]  ;;  %v472_v45 = vlaneseq }
  0x4f   : > { %421 = vmatprep.mubr.f32.mxu1 %v926_v0  ;;  %342 = vmatprep.mubr.f32.mxu0 %v926_v0  ;;  %v263_v4 = vld [vmem:[%s218_s30] sm:$0xff]  ;;  %vm273_vm0 = vcmask 1043456   ;;  %v1093_v5 = vld [vmem:[%s227_s27] sm:$0xff]  ;;  %s929_s20 = smov 124   ;;  %vm270_vm1 = vcmask 31744   ;;  %v930_v8 = vmov 10  }
  0x50   : > { %737 = vset.pattern.permute.xlu0 %v927_v1  ;;  %738 = vset.pattern.permute.xlu1 %v928_v2  ;;  %v350_v6 = vcombine.high %v263_v4, %v263_v4  ;;  %v269_v7 = vcombine.high %v1093_v5, %v1093_v5  ;;  %v473_v46 = vshrl.u32 %v472_v45, 7  ;;  %s653_s18 = sshll.u32 %s913_s15, 7  ;;  %s258_s4 = scalar_lea.vmem [#allocation8], %s1075_s19 }
  0x51   : > { %266 = vrot.lane.b32.xlu0 %v262_v3, %s929_s20  ;;  %437 = vperm.xlu1 %738, %v262_v3   ;;  %s503_s10 = sshll.u32 %s258_s4, 4  ;;  %s501_s28 = scalar_lea.hbm %s1143_s3, %s653_s18  ;;  %s504_s10 = int_to_ptr.vmem [resolvable:$true] %s503_s10 }
  0x52   : > { %641 = vmatprep.subr.msk.mxu1 %vm273_vm0, %v350_v6  ;;  %638 = vmatprep.subr.msk.mxu0 %vm273_vm0, %v269_v7  ;;  %v474_v47 = vsub.s32 0, %v473_v46  ;;  %s487_s29 = scalar_lea.sflag [#allocation4], %s1072_s8  ;;  %s833_s11 = scalar_lea.vmem %s504_s10, 128 }
  0x53   : > { %642 = vmatpush1.msk.msra.mxu1 %vm273_vm0, %v263_v4  ;;  %639 = vmatpush1.msk.msra.mxu0 %vm273_vm0, %v1093_v5  ;;  %p834_p1 = scmp.ne.s32.totalorder %s504_s10, %s833_s11  ;;  %s931_s23 = smov [#allocation8]  }
  0x54   : > { %643 = vmatmul.mubr.msk.f32.vlgmr.msra.gmra.mxu1 %vm270_vm1, %v262_v3  ;;  %s837_s0 = sshll.u32 %s931_s23, 4  ;;  %s838_s0 = int_to_ptr.vmem [resolvable:$false] %s837_s0 }
  0x55   : > { %429 = vperm.xlu0 %737, %v262_v3   ;;  %739 = vset.pattern.permute.xlu1 %v930_v8  ;;  %p835_p4 = pnand %p834_p1, %p1034_p3  ;;  %s839_s15 = scalar_lea.vmem %s838_s0, 256 }
  0x56   : > { %455 = vperm.xlu1 %739, %v262_v3   ;;  %p840_p11 = scmp.lt.s32.totalorder %s504_s10, %s838_s0  ;;  %p841_p12 = scmp.lt.s32.totalorder %s839_s15, %s833_s11 }
  0x57   : > { %p836_p8 = pneg %p835_p4 }
  0x58   : > { %p842_p13 = por %p841_p12, %p840_p11 }
  0x59   : > { %740 = vset.pattern.permute.xlu0 %v930_v8 }
  0x5a   : > { %p843_p0 = pnand %p842_p13, %p836_p8 }
  0xc3   : > { %v267_v9 = vpop.permute.xlu0 %266 }
  0xc4   : > { %640 = vmatmul.mubr.msk.f32.vlgmr.msra.gmra.mxu0 %vm270_vm1, %v267_v9 }
  0xcc   : > { %v438_v18 = vpop.permute.xlu1 %437 }
  0xd0   : > { %v430_v12 = vpop.permute.xlu0 %429 }
  0xd1   : > { %v456_v33 = vpop.permute.xlu1 %455 }
 0x114   : > { %v423_v10 = vpop.f32.mrf.mxu1 }
 0x116   : > { %v425_v14 = vpop.f32.mrf.mxu1 }
 0x184   : > { %v344_v11 = vpop.f32.mrf.mxu0 }
 0x185   : > { %v424_v13 = vadd.f32 %v423_v10, %v344_v11 }
 0x186   : > { %v346_v15 = vpop.f32.mrf.mxu0 }
 0x187   : > { %v426_v16 = vadd.f32 %v425_v14, %v346_v15  ;;  %v432_v17 = vadd.f32 %v430_v12, %v424_v13 }
 0x189   : > { %v433_v19 = vadd.f32 %v430_v12, %v426_v16  ;;  %v434_v20 = vmax.f32 %v432_v17, 0.0 }
 0x18b   : > { %v435_v21 = vmax.f32 %v433_v19, 0.0  ;;  %v440_v22 = vmul.f32 %v438_v18, %v434_v20 }
 0x18d   : > { %v441_v23 = vmul.f32 %v438_v18, %v435_v21  ;;  %v442_v24 = vrot.slane %v440_v22, 4 }
 0x18f   : > { %v443_v25 = vadd.f32 %v442_v24, %v440_v22  ;;  %v448_v26 = vrot.slane %v441_v23, 4 }
 0x191   : > { %v444_v27 = vrot.slane %v443_v25, 2  ;;  %v449_v28 = vadd.f32 %v448_v26, %v441_v23 }
 0x193   : > { %v450_v29 = vrot.slane %v449_v28, 2  ;;  %v445_v30 = vadd.f32 %v444_v27, %v443_v25 }
 0x195   : > { %v446_v31 = vrot.slane %v445_v30, 1  ;;  %v451_v32 = vadd.f32 %v450_v29, %v449_v28 }
 0x197   : > { %v447_v34 = vadd.f32 %v446_v31, %v445_v30  ;;  %v452_v35 = vrot.slane %v451_v32, 1 }
 0x199   : > { %v453_v36 = vadd.f32 %v452_v35, %v451_v32  ;;  %v458_v37 = vadd.f32 %v456_v33, %v447_v34 }
 0x19b   : > { %v459_v38 = vadd.f32 %v456_v33, %v453_v36  ;;  %v644_v39 = vmul.f32 -1.442695, %v458_v37 }
 0x19d   : > { %743 = vpow2.f32 %v644_v39  ;;  %v645_v40 = vmul.f32 -1.442695, %v459_v38 }
 0x19f   : > { %745 = vpow2.f32 %v645_v40 }
 0x1aa   : > { %v744_v41 = vpop.eup %743 }
 0x1ab   : > { %v466_v42 = vadd.f32 1.0, %v744_v41 }
 0x1ac   : > { %v746_v43 = vpop.eup %745 }
 0x1ad   : > { %v467_v44 = vadd.f32 1.0, %v746_v43  ;;  %747 = vrcp.f32 %v466_v42 }
 0x1af   : > { %749 = vrcp.f32 %v467_v44 }
 0x1ba   : > { %v748_v48 = vpop.eup %747 }
 0x1bb   : > { %v475_v50 = vrot.slane %v748_v48, %v474_v47 }
 0x1bc   : > { %v750_v49 = vpop.eup %749 }
 0x1bd   : > { %v479_v51 = vrot.slane %v750_v49, %v474_v47 }
 0x1bf   : > { %v482_v52 = vcombine.low %v475_v50, %v479_v51 }
 0x1c1   : > { %v484_v53 = vmul.f32 %v482_v52, %v1093_v5 }
 0x1c3   : > { %485 = vst [vmem:[%s258_s4] sm:$0xff] %v484_v53 }
 0x1c4   : > { %846 = shalt.err (!%p843_p0)
}
 0x1c5   : > { %s847_s19 = scalar_lea.hbm %s501_s28, 128  ;;  %s851_s30 = scalar_lea.hbm %s1143_s3, 256 }
 0x1c6   : > { %p848_p5 = scmp.ne.s32.totalorder %s501_s28, %s847_s19  ;;  %p852_p6 = scmp.lt.s32.totalorder %s501_s28, %s1143_s3 }
 0x1c7   : > { %p853_p9 = scmp.lt.s32.totalorder %s851_s30, %s847_s19 }
 0x1c8   : > { %p849_p7 = pnand %p848_p5, %p1034_p3 }
 0x1c9   : > { %p854_p10 = por %p853_p9, %p852_p6 }
 0x1ca   : > { %p850_p2 = pneg %p849_p7 }
 0x1cc   : > { %p855_p1 = pnand %p854_p10, %p850_p2 }
 0x1ce   : > { %858 = shalt.err (!%p855_p1)
}
 0x1cf   : > { %662 = dma.vmem_to_hbm [thread:$0]  (%p1034_p3), %s504_s10, 128, %s501_s28, %s487_s29  }
 0x1d0 PF: > { %s515_s27 = sand.u32 1, %s901_s12   ;;  %p1153_p4 = scmp.ne.s32.totalorder %s1146_s21, 0 }
 0x1d1   : > { %p1154_p8 = scmp.ge.s32.totalorder %s921_s17, 2  ;;  %s516_s20 = scalar_lea.sflag [#allocation4], %s515_s27 }
 0x1d3   : > { %p676_p11 = pnand %p1154_p8, %p1153_p4 }
 0x1d5   : > { %p677_p12 = pneg %p676_p11 }
 0x1d7   : > { %896 = dma.done.wait (%p677_p12), %s516_s20, 128  }
 0x1d8   : > { %898 = vsyncadd (%p677_p12), %s516_s20, 4294967168  ;;  %s22_s17 = sadd.s32 1, %s921_s17   ;;  %s1155_s12 = smov %s905_s13 }
 0x1d9   : > { %p19_p13 = scmp.ge.s32.totalorder %s22_s17, 4   ;;  %s1156_s13 = smov %s909_s14 }
 0x1da   : > { %s1157_s14 = smov %s1040_s7  ;;  %s1158_s15 = smov %s917_s16 }
 0x1db   : > { %s1159_s16 = smov %s1161_s26  ;;  %21 = sbr.rel (!%p19_p13) target bundleno = 10 (0xa), region = 94 }
 0x1e0   :  { %521 = vsyncpa [#allocation3], 1 }
 0x1e1   :  { %523 = vsyncpa [#allocation3 + $0x1], 1 }
 0x1e2   :  { %524 = vsyncpa [#allocation6], 1 }
 0x1e3   :  { %526 = vsyncpa [#allocation6 + $0x1], 1 }
 0x1e4   :  { %527 = vsyncpa [#allocation4], 1 }
 0x1e5   :  { %529 = vsyncpa [#allocation4 + $0x1], 1 }

</bundles_post_ra>
